<compile_context>
chip_gen: v5e
topology: v5e:2x2
jax: 0.10.0
libtpu: 0.0.40
codegen_flags: <defaults>
</compile_context>

<pallas_src>
import functools

import jax
import jax.numpy as jnp
from jax.experimental import pallas as pl
from jax.experimental.pallas import tpu as pltpu


def _round_up(x, m):
    return (x + m - 1) // m * m


def _vmem_capacity_bytes():
    try:
        return int(pltpu.get_tpu_info().vmem_capacity_bytes)
    except Exception:
        return 64 * 1024 * 1024          # conservative (v7x-sized) fallback


# ---------------------------------------------------------------------------
# Fused kernel: conv1 + ReLU + conv2 + ReLU + residual add + ReLU
# ---------------------------------------------------------------------------

def _temporal_block_kernel(x_halo_ref, x_cur_ref, w1_ref, b1_ref, w2_ref,
                           b2_ref, wd_ref, bd_ref, o_ref, *,
                           kernel_size, dilation, fold_taps, compute_dtype):
    """One (batch, time-tile) grid step of the whole TemporalBlock.

    x_halo_ref: (1, C_in, H)       last H (>= 2*pad) lanes before this tile
    x_cur_ref:  (1, C_in, T)       current time tile of x
    w1_ref:     (C_out, K*C_in)    conv1 weight, taps folded into contraction
    w2_ref:     (C_out, K*C_out)   conv2 weight, taps folded into contraction
    wd_ref:     (C_out, C_in)      1x1 downsample weight
    b*_ref:     (C_out, 1)         biases (f32)
    o_ref:      (1, C_out, T)
    """
    K = kernel_size
    d = dilation
    pad = d * (K - 1)
    T = o_ref.shape[2]
    H = x_halo_ref.shape[2]
    c_in = x_cur_ref.shape[1]
    c_out = o_ref.shape[1]
    th1 = T + pad            # conv2 needs h1 over global times [t0 - pad, t0 + T)
    base = H - 2 * pad       # column of global time t0 - 2*pad inside xw

    x_cur = x_cur_ref[0]                                   # (C_in, T)
    x_halo = x_halo_ref[0]                                 # (C_in, H), real zeros on tile 0
    xw = jnp.concatenate([x_halo, x_cur], axis=-1)         # (C_in, H + T)

    # ---- conv1 + bias + ReLU over [t0 - pad, t0 + T) ----
    if fold_taps:
        # Single MXU contraction over K*C_in (best when channels are small).
        x1 = jnp.concatenate(
            [xw[:, base + k * d: base + k * d + th1] for k in range(K)],
            axis=0)                                        # (K*C_in, th1)
        acc1 = jnp.dot(w1_ref[...], x1, preferred_element_type=jnp.float32)
    else:
        # K accumulating dots on shifted slices: no (K*C_in, th1) tap stack in
        # VMEM (preferred for large C, esp. on v7x's 64 MiB VMEM).
        acc1 = jnp.dot(w1_ref[:, :c_in], xw[:, base: base + th1],
                       preferred_element_type=jnp.float32)
        for k in range(1, K):
            acc1 = acc1 + jnp.dot(
                w1_ref[:, k * c_in:(k + 1) * c_in],
                xw[:, base + k * d: base + k * d + th1],
                preferred_element_type=jnp.float32)
    h1 = jnp.maximum(acc1 + b1_ref[...], 0.0)              # (C_out, th1) f32

    # conv2's causal zero padding: h1 at global times < 0 must be exactly zero
    # (x there is zero, but bias+ReLU is not).  Only tile 0 has such columns;
    # the mask is a (1, th1) row, so steady-state cost is one broadcast mul.
    not_first = (pl.program_id(1) > 0).astype(jnp.float32)
    lane = jax.lax.broadcasted_iota(jnp.int32, (1, th1), 1)
    keep = jnp.maximum((lane >= pad).astype(jnp.float32), not_first)
    h1 = (h1 * keep).astype(compute_dtype)

    # ---- residual branch: 1x1 downsample conv on the current tile ----
    res = jnp.dot(wd_ref[...], x_cur,
                  preferred_element_type=jnp.float32) + bd_ref[...]

    # ---- conv2 + bias + ReLU, residual add, final ReLU ----
    if fold_taps:
        h2s = jnp.concatenate(
            [h1[:, k * d: k * d + T] for k in range(K)], axis=0)  # (K*C_out, T)
        acc2 = jnp.dot(w2_ref[...], h2s, preferred_element_type=jnp.float32)
    else:
        acc2 = jnp.dot(w2_ref[:, :c_out], h1[:, :T],
                       preferred_element_type=jnp.float32)
        for k in range(1, K):
            acc2 = acc2 + jnp.dot(
                w2_ref[:, k * c_out:(k + 1) * c_out],
                h1[:, k * d: k * d + T],
                preferred_element_type=jnp.float32)
    h2 = jnp.maximum(acc2 + b2_ref[...], 0.0)

    o_ref[0] = jnp.maximum(h2 + res, 0.0).astype(o_ref.dtype)


# ---------------------------------------------------------------------------
# Host-side parameter / layout prep + wrapper
# ---------------------------------------------------------------------------

def _prep_conv_weight(w, c_out_p, c_in_p, dtype):
    """(C_out, C_in, K) -> zero-padded, K folded into the contraction dim:
    (C_out_p, K*C_in_p).  Column order k*C_in_p + c matches the in-kernel
    tap stacking / per-tap slicing."""
    c_out, c_in, k = w.shape
    wp = jnp.pad(w, ((0, c_out_p - c_out), (0, c_in_p - c_in), (0, 0)))
    return jnp.transpose(wp, (0, 2, 1)).reshape(c_out_p, k * c_in_p).astype(dtype)


def _prep_bias(b, c_out_p):
    return jnp.pad(b, (0, c_out_p - b.shape[0])).reshape(c_out_p, 1).astype(
        jnp.float32)


def temporal_block_forward(params, x, *, dilation, tile_l=None,
                           compute_dtype=jnp.float32, fold_taps=None,
                           vmem_limit_bytes=None):
    """Forward pass of TemporalBlock (inference mode: dropout = identity).

    x: (N, C_in, L) float32 -> (N, C_out, L) float32.
    compute_dtype: MXU operand dtype (jnp.bfloat16 halves x/W DMA + VMEM;
                   accumulation stays f32).
    """
    N, c_in, L = x.shape
    c_out, _, K = params["w1"].shape
    pad = dilation * (K - 1)

    # ---- one-time layout prep (host side) ----
    # Sublane-aligned channels: 8 rows for f32 operands, 16 for bf16 (packed).
    sub = 8 * (4 // jnp.dtype(compute_dtype).itemsize)
    c_in_p = _round_up(c_in, sub)
    c_out_p = _round_up(c_out, sub)

    # Halo = the (>= 2*pad) lanes of previous-tile context conv1+conv2 need,
    # rounded to a lane multiple.  The time tile T is a multiple of the halo so
    # both windows land on block-aligned offsets of the same padded array.
    H = _round_up(max(2 * pad, 1), 128)
    if tile_l is None:
        # Bigger tiles amortize per-grid-step overhead (v5e/v6e, 128 MiB VMEM);
        # stay tighter on v7x (64 MiB VMEM per TensorCore).
        tile_l = 512 if _vmem_capacity_bytes() <= 64 * 1024 * 1024 else 1024
    T = min(tile_l, _round_up(L, 128))
    T = _round_up(max(T, H), H)
    Lp = _round_up(L, T)

    # Single fused pad: channel alignment + T lanes of causal zeros on the left
    # (tile 0's halo reads genuine zeros) + right pad to the tile grid.
    xp = jnp.pad(x, ((0, 0), (0, c_in_p - c_in), (T, Lp - L))).astype(compute_dtype)

    w1f = _prep_conv_weight(params["w1"], c_out_p, c_in_p, compute_dtype)
    w2f = _prep_conv_weight(params["w2"], c_out_p, c_out_p, compute_dtype)
    wdf = _prep_conv_weight(params["wd"], c_out_p, c_in_p, compute_dtype)
    b1 = _prep_bias(params["b1"], c_out_p)
    b2 = _prep_bias(params["b2"], c_out_p)
    bd = _prep_bias(params["bd"], c_out_p)

    if fold_taps is None:
        # Small contractions: fold taps into one dot.  Large channels: per-tap
        # accumulating dots already fill the MXU and skip the tap-stack copies.
        fold_taps = K * max(c_in_p, c_out_p) <= 256

    grid = (N, Lp // T)
    blocks_per_tile = T // H

    # Tile t covers padded lanes [(t+1)*T, (t+2)*T); its halo is the H lanes
    # just before it, at padded lane (t+1)*T - H (an exact multiple of H).
    x_halo_spec = pl.BlockSpec(
        (1, c_in_p, H), lambda n, t: (n, 0, (t + 1) * blocks_per_tile - 1))
    x_cur_spec = pl.BlockSpec((1, c_in_p, T), lambda n, t: (n, 0, t + 1))

    def full_spec(a):
        zero = (0,) * a.ndim
        return pl.BlockSpec(tuple(a.shape), lambda n, t: zero)

    kernel = functools.partial(_temporal_block_kernel, kernel_size=K,
                               dilation=dilation, fold_taps=fold_taps,
                               compute_dtype=compute_dtype)

    if vmem_limit_bytes is None:
        vmem_limit_bytes = min(96 * 1024 * 1024,
                               (_vmem_capacity_bytes() * 3) // 4)

    out = pl.pallas_call(
        kernel,
        out_shape=jax.ShapeDtypeStruct((N, c_out_p, Lp), x.dtype),
        grid=grid,
        in_specs=[
            x_halo_spec, x_cur_spec,
            full_spec(w1f), full_spec(b1),
            full_spec(w2f), full_spec(b2),
            full_spec(wdf), full_spec(bd),
        ],
        out_specs=pl.BlockSpec((1, c_out_p, T), lambda n, t: (n, 0, t)),
        compiler_params=pltpu.CompilerParams(
            dimension_semantics=("parallel", "parallel"),
            vmem_limit_bytes=vmem_limit_bytes),
    )(xp, xp, w1f, b1, w2f, b2, wdf, bd)

    return out[:, :c_out, :L]


# ---------------------------------------------------------------------------
# Parameters (weight_norm parameterization, PyTorch init style)
# ---------------------------------------------------------------------------

def weight_norm_weight(v, g):
    """PyTorch weight_norm for Conv1d (dim=0): W[o] = g[o] * v[o] / ||v[o]||."""
    norm = jnp.sqrt(jnp.sum(v * v, axis=(1, 2), keepdims=True))
    return (g.reshape(-1, 1, 1) / norm) * v


def make_params(key, n_inputs, n_outputs, kernel_size):
    ks = jax.random.split(key, 8)
    v1 = 0.01 * jax.random.normal(ks[0], (n_outputs, n_inputs, kernel_size),
                                  jnp.float32)
    g1 = 1.0 + 0.1 * jax.random.normal(ks[1], (n_outputs,), jnp.float32)
    b1 = 0.05 * jax.random.normal(ks[2], (n_outputs,), jnp.float32)
    v2 = 0.01 * jax.random.normal(ks[3], (n_outputs, n_outputs, kernel_size),
                                  jnp.float32)
    g2 = 1.0 + 0.1 * jax.random.normal(ks[4], (n_outputs,), jnp.float32)
    b2 = 0.05 * jax.random.normal(ks[5], (n_outputs,), jnp.float32)
    # downsample (plain Conv1d, kernel_size=1) — present since n_in != n_out
    wd = 0.01 * jax.random.normal(ks[6], (n_outputs, n_inputs, 1), jnp.float32)
    bd = 0.05 * jax.random.normal(ks[7], (n_outputs,), jnp.float32)
    return dict(
        w1=weight_norm_weight(v1, g1), b1=b1,
        w2=weight_norm_weight(v2, g2), b2=b2,
        wd=wd, bd=bd,
    )


# ---------------------------------------------------------------------------
# Pure-JAX reference (for the correctness checks)
# ---------------------------------------------------------------------------

def _ref_causal_conv(x, w, b, dilation):
    K = w.shape[2]
    pad = dilation * (K - 1)
    xp = jnp.pad(x, ((0, 0), (0, 0), (pad, 0)))
    L = x.shape[2]
    out = jnp.zeros((x.shape[0], w.shape[0], L), jnp.float32)
    for k in range(K):
        out = out + jnp.einsum("oc,ncl->nol", w[:, :, k],
                               xp[:, :, k * dilation:k * dilation + L])
    return out + b.reshape(1, -1, 1)


def _ref_forward(params, x, dilation):
    h1 = jax.nn.relu(_ref_causal_conv(x, params["w1"], params["b1"], dilation))
    h2 = jax.nn.relu(_ref_causal_conv(h1, params["w2"], params["b2"], dilation))
    res = jnp.einsum("oc,ncl->nol", params["wd"][:, :, 0], x) \
        + params["bd"].reshape(1, -1, 1)
    return jax.nn.relu(h2 + res)


def _run_and_check(name, key, N, c_in, c_out, L, K, dilation, tol, **kw):
    k_x, k_p = jax.random.split(key)
    x = jax.random.normal(k_x, (N, c_in, L), jnp.float32)
    params = make_params(k_p, c_in, c_out, K)
    fwd = jax.jit(functools.partial(temporal_block_forward,
                                    dilation=dilation, **kw))
    out = jax.block_until_ready(fwd(params, x))
    ref = _ref_forward(params, x, dilation)
    assert out.shape == (N, c_out, L), f"{name}: bad shape {out.shape}"
    err = float(jnp.max(jnp.abs(out - ref)))
    assert err < tol, f"{name}: max abs err {err} >= {tol}"


# ---------------------------------------------------------------------------
# Main
# ---------------------------------------------------------------------------

if __name__ == "__main__":
    key = jax.random.PRNGKey(0)
    ks = jax.random.split(key, 5)

    # TemporalBlock config matching the PyTorch module: n_inputs=4, n_outputs=8,
    # kernel_size=3, stride=1, dilation=2, padding=(K-1)*dilation=4;
    # batch=2, seq_len=16.
    _run_and_check("f32", ks[0], 2, 4, 8, 16, 3, 2, 1e-4)
    # bf16 MXU operands with f32 accumulation (halves x/W DMA and VMEM).
    _run_and_check("bf16", ks[1], 2, 4, 8, 16, 3, 2, 2e-2,
                   compute_dtype=jnp.bfloat16)
    # K-accumulating-dot path (no tap-stack materialization; large-C / v7x path).
    _run_and_check("nofold", ks[2], 2, 4, 8, 16, 3, 2, 1e-4, fold_taps=False)
    # Multi-tile runs: exercise the 128-lane halo across tile boundaries,
    # non-multiple-of-8 channel counts, and a different dilation.
    _run_and_check("multitile", ks[3], 2, 6, 10, 300, 3, 2, 1e-4, tile_l=128)
    _run_and_check("multitile2", ks[4], 1, 4, 8, 300, 3, 3, 1e-4, tile_l=256)

    print("KERNEL_OK")
</pallas_src>

<mosaic_0001>
module attributes {stable_mosaic.version = 11 : i64} {
  func.func @_temporal_block_kernel(%arg0: i32, %arg1: i32, %arg2: memref<1x8x128xf32, #tpu.memory_space<vmem>>, %arg3: memref<1x8x128xf32, #tpu.memory_space<vmem>>, %arg4: memref<8x24xf32, #tpu.memory_space<vmem>>, %arg5: memref<8x1xf32, #tpu.memory_space<vmem>>, %arg6: memref<8x24xf32, #tpu.memory_space<vmem>>, %arg7: memref<8x1xf32, #tpu.memory_space<vmem>>, %arg8: memref<8x8xf32, #tpu.memory_space<vmem>>, %arg9: memref<8x1xf32, #tpu.memory_space<vmem>>, %arg10: memref<1x8x128xf32, #tpu.memory_space<vmem>>) attributes {dimension_semantics = [#tpu.dimension_semantics<parallel>, #tpu.dimension_semantics<parallel>], iteration_bounds = array<i64: 2, 1>, scalar_prefetch = 0 : i64, scratch_operands = 0 : i64, tpu.core_type = #tpu.core_type<tc>, window_params = [{transform_indices = @transform_0, window_bounds = array<i64: 1, 8, 128>}, {transform_indices = @transform_1, window_bounds = array<i64: 1, 8, 128>}, {pipeline_mode = #tpu.pipeline_mode<synchronous>, transform_indices = @transform_2, window_bounds = array<i64: 8, 24>}, {pipeline_mode = #tpu.pipeline_mode<synchronous>, transform_indices = @transform_3, window_bounds = array<i64: 8, 1>}, {pipeline_mode = #tpu.pipeline_mode<synchronous>, transform_indices = @transform_4, window_bounds = array<i64: 8, 24>}, {pipeline_mode = #tpu.pipeline_mode<synchronous>, transform_indices = @transform_5, window_bounds = array<i64: 8, 1>}, {pipeline_mode = #tpu.pipeline_mode<synchronous>, transform_indices = @transform_6, window_bounds = array<i64: 8, 8>}, {pipeline_mode = #tpu.pipeline_mode<synchronous>, transform_indices = @transform_7, window_bounds = array<i64: 8, 1>}, {transform_indices = @transform_8, window_bounds = array<i64: 1, 8, 128>}]} {
    %c0 = arith.constant 0 : index
    %c0_0 = arith.constant 0 : index
    %c0_1 = arith.constant 0 : index
    %0 = vector.load %arg3[%c0, %c0_0, %c0_1] : memref<1x8x128xf32, #tpu.memory_space<vmem>>, vector<1x8x128xf32>
    %1 = vector.shape_cast %0 : vector<1x8x128xf32> to vector<8x128xf32>
    %c0_2 = arith.constant 0 : index
    %c0_3 = arith.constant 0 : index
    %c0_4 = arith.constant 0 : index
    %2 = vector.load %arg2[%c0_2, %c0_3, %c0_4] : memref<1x8x128xf32, #tpu.memory_space<vmem>>, vector<1x8x128xf32>
    %3 = vector.shape_cast %2 : vector<1x8x128xf32> to vector<8x128xf32>
    %4 = tpu.concatenate %3, %1 in 1 : vector<8x128xf32>, vector<8x128xf32> -> vector<8x256xf32>
    %5 = vector.extract_strided_slice %4 {offsets = [0, 120], sizes = [8, 132], strides = [1, 1]} : vector<8x256xf32> to vector<8x132xf32>
    %6 = vector.extract_strided_slice %4 {offsets = [0, 122], sizes = [8, 132], strides = [1, 1]} : vector<8x256xf32> to vector<8x132xf32>
    %7 = vector.extract_strided_slice %4 {offsets = [0, 124], sizes = [8, 132], strides = [1, 1]} : vector<8x256xf32> to vector<8x132xf32>
    %8 = tpu.concatenate %5, %6, %7 in 0 : vector<8x132xf32>, vector<8x132xf32>, vector<8x132xf32> -> vector<24x132xf32>
    %c0_5 = arith.constant 0 : index
    %c0_6 = arith.constant 0 : index
    %9 = vector.load %arg4[%c0_5, %c0_6] : memref<8x24xf32, #tpu.memory_space<vmem>>, vector<8x24xf32>
    %cst = arith.constant dense<0.000000e+00> : vector<8x132xf32>
    %10 = tpu.matmul %9, %8, %cst {dimension_numbers = #tpu.dot_dimension_numbers<[1], [0], [0], [1], [0, 0, 1, 1], [], []>} : vector<8x24xf32>, vector<24x132xf32>, vector<8x132xf32> -> vector<8x132xf32>
    %c0_7 = arith.constant 0 : index
    %c0_8 = arith.constant 0 : index
    %11 = vector.load %arg5[%c0_7, %c0_8] : memref<8x1xf32, #tpu.memory_space<vmem>>, vector<8x1xf32>
    %12 = vector.broadcast %11 : vector<8x1xf32> to vector<8x132xf32>
    %13 = arith.addf %10, %12 : vector<8x132xf32>
    %cst_9 = arith.constant 0.000000e+00 : f32
    %14 = vector.broadcast %cst_9 : f32 to vector<8x132xf32>
    %15 = arith.maximumf %13, %14 : vector<8x132xf32>
    %c0_i32 = arith.constant 0 : i32
    %16 = arith.cmpi sgt, %arg1, %c0_i32 : i32
    %17 = arith.extui %16 : i1 to i32
    %18 = arith.sitofp %17 : i32 to f32
    %19 = tpu.iota {dimensions = array<i32: 1>} : vector<1x132xi32>
    %c4_i32 = arith.constant 4 : i32
    %20 = vector.broadcast %c4_i32 : i32 to vector<1x132xi32>
    %21 = arith.cmpi sge, %19, %20 : vector<1x132xi32>
    %22 = arith.extui %21 : vector<1x132xi1> to vector<1x132xi32>
    %23 = arith.sitofp %22 : vector<1x132xi32> to vector<1x132xf32>
    %24 = vector.broadcast %18 : f32 to vector<1x132xf32>
    %25 = arith.maximumf %23, %24 : vector<1x132xf32>
    %26 = vector.broadcast %25 : vector<1x132xf32> to vector<8x132xf32>
    %27 = arith.mulf %15, %26 : vector<8x132xf32>
    %c0_10 = arith.constant 0 : index
    %c0_11 = arith.constant 0 : index
    %28 = vector.load %arg8[%c0_10, %c0_11] : memref<8x8xf32, #tpu.memory_space<vmem>>, vector<8x8xf32>
    %cst_12 = arith.constant dense<0.000000e+00> : vector<8x128xf32>
    %29 = tpu.matmul %28, %1, %cst_12 {dimension_numbers = #tpu.dot_dimension_numbers<[1], [0], [0], [1], [0, 0, 1, 1], [], []>} : vector<8x8xf32>, vector<8x128xf32>, vector<8x128xf32> -> vector<8x128xf32>
    %c0_13 = arith.constant 0 : index
    %c0_14 = arith.constant 0 : index
    %30 = vector.load %arg9[%c0_13, %c0_14] : memref<8x1xf32, #tpu.memory_space<vmem>>, vector<8x1xf32>
    %31 = vector.broadcast %30 : vector<8x1xf32> to vector<8x128xf32>
    %32 = arith.addf %29, %31 : vector<8x128xf32>
    %33 = vector.extract_strided_slice %27 {offsets = [0, 0], sizes = [8, 128], strides = [1, 1]} : vector<8x132xf32> to vector<8x128xf32>
    %34 = vector.extract_strided_slice %27 {offsets = [0, 2], sizes = [8, 128], strides = [1, 1]} : vector<8x132xf32> to vector<8x128xf32>
    %35 = vector.extract_strided_slice %27 {offsets = [0, 4], sizes = [8, 128], strides = [1, 1]} : vector<8x132xf32> to vector<8x128xf32>
    %36 = tpu.concatenate %33, %34, %35 in 0 : vector<8x128xf32>, vector<8x128xf32>, vector<8x128xf32> -> vector<24x128xf32>
    %c0_15 = arith.constant 0 : index
    %c0_16 = arith.constant 0 : index
    %37 = vector.load %arg6[%c0_15, %c0_16] : memref<8x24xf32, #tpu.memory_space<vmem>>, vector<8x24xf32>
    %cst_17 = arith.constant dense<0.000000e+00> : vector<8x128xf32>
    %38 = tpu.matmul %37, %36, %cst_17 {dimension_numbers = #tpu.dot_dimension_numbers<[1], [0], [0], [1], [0, 0, 1, 1], [], []>} : vector<8x24xf32>, vector<24x128xf32>, vector<8x128xf32> -> vector<8x128xf32>
    %c0_18 = arith.constant 0 : index
    %c0_19 = arith.constant 0 : index
    %39 = vector.load %arg7[%c0_18, %c0_19] : memref<8x1xf32, #tpu.memory_space<vmem>>, vector<8x1xf32>
    %40 = vector.broadcast %39 : vector<8x1xf32> to vector<8x128xf32>
    %41 = arith.addf %38, %40 : vector<8x128xf32>
    %cst_20 = arith.constant 0.000000e+00 : f32
    %42 = vector.broadcast %cst_20 : f32 to vector<8x128xf32>
    %43 = arith.maximumf %41, %42 : vector<8x128xf32>
    %44 = arith.addf %43, %32 : vector<8x128xf32>
    %cst_21 = arith.constant 0.000000e+00 : f32
    %45 = vector.broadcast %cst_21 : f32 to vector<8x128xf32>
    %46 = arith.maximumf %44, %45 : vector<8x128xf32>
    %c0_22 = arith.constant 0 : index
    %c0_23 = arith.constant 0 : index
    %c0_24 = arith.constant 0 : index
    %47 = vector.load %arg10[%c0_22, %c0_23, %c0_24] : memref<1x8x128xf32, #tpu.memory_space<vmem>>, vector<1x8x128xf32>
    %48 = vector.shape_cast %47 : vector<1x8x128xf32> to vector<8x128xf32>
    %49 = vector.shape_cast %46 : vector<8x128xf32> to vector<1x8x128xf32>
    tpu.vector_store %arg10[%c0_22, %c0_23, %c0_24], %49 {strides = array<i32>} : memref<1x8x128xf32, #tpu.memory_space<vmem>>, vector<1x8x128xf32>,
    return
  }
  func.func @transform_0(%arg0: i32, %arg1: i32) -> (i32, i32, i32) {
    %c1_i32 = arith.constant 1 : i32
    %0 = arith.addi %arg1, %c1_i32 : i32
    %c1_i32_0 = arith.constant 1 : i32
    %1 = arith.muli %0, %c1_i32_0 : i32
    %c1_i32_1 = arith.constant 1 : i32
    %2 = arith.subi %1, %c1_i32_1 : i32
    %c0_i32 = arith.constant 0 : i32
    %c0_i32_2 = arith.constant 0 : i32
    return %arg0, %c0_i32, %2 : i32, i32, i32
  }
  func.func @transform_1(%arg0: i32, %arg1: i32) -> (i32, i32, i32) {
    %c1_i32 = arith.constant 1 : i32
    %0 = arith.addi %arg1, %c1_i32 : i32
    %c0_i32 = arith.constant 0 : i32
    %c0_i32_0 = arith.constant 0 : i32
    return %arg0, %c0_i32, %0 : i32, i32, i32
  }
  func.func @transform_2(%arg0: i32, %arg1: i32) -> (i32, i32) {
    %c0_i32 = arith.constant 0 : i32
    %c0_i32_0 = arith.constant 0 : i32
    %c0_i32_1 = arith.constant 0 : i32
    return %c0_i32, %c0_i32_0 : i32, i32
  }
  func.func @transform_3(%arg0: i32, %arg1: i32) -> (i32, i32) {
    %c0_i32 = arith.constant 0 : i32
    %c0_i32_0 = arith.constant 0 : i32
    %c0_i32_1 = arith.constant 0 : i32
    return %c0_i32, %c0_i32_0 : i32, i32
  }
  func.func @transform_4(%arg0: i32, %arg1: i32) -> (i32, i32) {
    %c0_i32 = arith.constant 0 : i32
    %c0_i32_0 = arith.constant 0 : i32
    %c0_i32_1 = arith.constant 0 : i32
    return %c0_i32, %c0_i32_0 : i32, i32
  }
  func.func @transform_5(%arg0: i32, %arg1: i32) -> (i32, i32) {
    %c0_i32 = arith.constant 0 : i32
    %c0_i32_0 = arith.constant 0 : i32
    %c0_i32_1 = arith.constant 0 : i32
    return %c0_i32, %c0_i32_0 : i32, i32
  }
  func.func @transform_6(%arg0: i32, %arg1: i32) -> (i32, i32) {
    %c0_i32 = arith.constant 0 : i32
    %c0_i32_0 = arith.constant 0 : i32
    %c0_i32_1 = arith.constant 0 : i32
    return %c0_i32, %c0_i32_0 : i32, i32
  }
  func.func @transform_7(%arg0: i32, %arg1: i32) -> (i32, i32) {
    %c0_i32 = arith.constant 0 : i32
    %c0_i32_0 = arith.constant 0 : i32
    %c0_i32_1 = arith.constant 0 : i32
    return %c0_i32, %c0_i32_0 : i32, i32
  }
  func.func @transform_8(%arg0: i32, %arg1: i32) -> (i32, i32, i32) {
    %c0_i32 = arith.constant 0 : i32
    %c0_i32_0 = arith.constant 0 : i32
    return %arg0, %c0_i32, %arg1 : i32, i32, i32
  }
}

</mosaic_0001>

<bundles_post_ra>
// kernel: temporal_block_forward.1
= control target key start
LH: loop header
LB: loop body
LE: loop exit
PB: predicated region body
PF: predicated region fallthrough
CT: control target
= control target key end

     0   :  { %13 = vsyncpa [#allocation3], 0  ;;  %s1045_s0 = inlined_call_operand.vmem [shape: f32[2,8,256], index: 0, kind: input, shape index: {}, may-alias: {0,1}]   ;;  %s1046_s1 = inlined_call_operand.vmem [shape: f32[2,8,256], index: 1, kind: input, shape index: {}, may-alias: {0,1}]   ;;  %s1047_s2 = inlined_call_operand.vmem [shape: f32[8,24], index: 2, kind: input, shape index: {}]   ;;  %s1048_s3 = inlined_call_operand.vmem [shape: f32[8,1], index: 3, kind: input, shape index: {}]   ;;  %s1049_s4 = inlined_call_operand.vmem [shape: f32[8,24], index: 4, kind: input, shape index: {}]   ;;  %s1050_s5 = inlined_call_operand.vmem [shape: f32[8,1], index: 5, kind: input, shape index: {}]   ;;  %s1051_s6 = inlined_call_operand.vmem [shape: f32[8,8], index: 6, kind: input, shape index: {}]   ;;  %s1052_s7 = inlined_call_operand.vmem [shape: f32[8,1], index: 7, kind: input, shape index: {}]   ;;  %s1053_s8 = inlined_call_operand.hbm [shape: f32[2,8,128], index: 8, kind: output, shape index: {}]  }
   0x1   :  { %15 = vsyncpa [#allocation3 + $0x1], 0  ;;  %s912_s27 = smov 0   ;;  %s914_s28 = smov 0  }
   0x2   :  { %s916_s29 = smov 0   ;;  %s918_s30 = smov 0  }
   0x3   :  { %s920_s9 = smov 0   ;;  %s922_s10 = smov 0  }
   0x4 LB: > { %s662_s11 = sadd.s32 4294967295, %s860_s10   ;;  %s663_s12 = sadd.s32 4294967294, %s860_s10   ;;  %s860_s10 = sphi %s922_s10, %s21_s10   ;;  %s856_s9 = sphi %s920_s9, %s1060_s9   ;;  %s852_s30 = sphi %s918_s30, %s1059_s30   ;;  %s848_s29 = sphi %s916_s29, %s1058_s29   ;;  %s844_s28 = sphi %s914_s28, %s1057_s28   ;;  %s840_s27 = sphi %s912_s27, %s1056_s27  }
   0x5   : > { %s33_s13 = sadd.s32 1, %s856_s9  ;;  %s226_s14 = sadd.s32 1, %s848_s29 }
   0x6   : > { %p35_p0 = scmp.ge.s32.totalorder %s33_s13, 2  ;;  %p236_p1 = scmp.ne.s32.totalorder %s848_s29, %s844_s28 }
   0x7   : > { %p237_p2 = scmp.eq.s32.totalorder %s662_s11, 1  ;;  %p242_p3 = scmp.ne.s32.totalorder %s844_s28, %s840_s27 }
   0x8   : > { %s1062_s13 = smov (%p35_p0, %s33_s13), 0  ;;  %p243_p5 = scmp.eq.s32.totalorder %s663_s12, 1 }
   0x9   : > { %p952_p4 = por %p237_p2, %p236_p1  ;;  %s221_s16 = ssub.s32 %s856_s9, %s1062_s13 }
   0xa   : > { %p666_p6 = scmp.ge.s32.totalorder %s860_s10, 1  ;;  %p224_p7 = scmp.eq.s32.totalorder %s221_s16, 0 }
   0xb   : > { %p959_p8 = por %p243_p5, %p242_p3  ;;  %p303_p9 = scmp.lt.s32.totalorder %s860_s10, 3 }
   0xc   : > { %s965_s18 = scalar_select %p224_p7, %s848_s29, %s226_s14  }
   0xd   : > { %p304_p10 = pnand %p666_p6, %p303_p9 }
   0xe   : > { %p349_p11 = scmp.lt.s32.totalorder (!%p304_p10), %s852_s30, 1  ;;  %s862_s12 = smov (!%p304_p10), 124  }
   0xf   : > { %307 = sbr.rel (%p304_p10) target bundleno = 677 (0x2a5), region = 52  ;;  %s863_s14 = smov (!%p304_p10), 126  }
  0x10   : > { %s864_s16 = smov (!%p304_p10), 8   ;;  %s678_s21 = sshll.u32 (!%p304_p10), %s852_s30, 3 }
  0x14   : > { %s350_s19 = scalar_select %p349_p11, %s852_s30, 1  ;;  %vm381_vm0 = vcmask 1014784   ;;  %vm375_vm1 = vcmask 1031168   ;;  %v384_v13 = vld [vmem:[%s1048_s3] sm:$0xff]  ;;  %v865_v14 = vmov 0   ;;  %vm402_vm2 = vcmask 64512  }
  0x15   : > { %770 = vset.pattern.permute.xlu2 %v865_v14  ;;  %781 = vset.pattern.permute.xlu0 %v865_v14  ;;  %v520_v15 = vld [vmem:[%s1050_s5] sm:$0xff]  ;;  %vm412_vm3 = vcmask 195584   ;;  %v461_v29 = vlaneseq  ;;  %v866_v31 = vmov 0.0  }
  0x16   : > { %s681_s20 = sshll.u32 %s350_s19, 4  ;;  %v383_v28 = vld [vmem:[%s1047_s2] sm:$0xff]  ;;  %s346_s19 = sand.u32 1, %s844_s28  }
  0x17   : > { %s356_s23 = scalar_lea.vmem %s1045_s0, %s681_s20  ;;  %s683_s24 = sadd.s32 8, %s681_s20  ;;  %v462_v30 = vand.u32 127, %v461_v29  ;;  %v475_v43 = vld [vmem:[%s1051_s6] sm:$0xff] }
  0x18   : > { %s365_s11 = scalar_lea.vmem %s1046_s1, %s683_s24  ;;  %v368_v0 = vld [vmem:[%s356_s23] sm:$0xff]  ;;  %s667_s20 = sshll.u32 %s346_s19, 3 }
  0x19   : > { %v367_v1 = vld [vmem:[%s365_s11] sm:$0xff]  ;;  %vm464_vm4 = vcmp.ge.s32.totalorder %v462_v30, 4  ;;  %s565_s24 = scalar_lea.hbm %s1053_s8, %s678_s21  ;;  %s348_s25 = scalar_lea.vmem [#allocation2], %s667_s20 }
  0x1a   : > { %v745_v2 = vpack.i.bf16 %v367_v1, %v368_v0  ;;  %500 = vmatpush.msra.mxu2 %v367_v1  ;;  %v674_v32 = vsel %vm464_vm4, 1.0, %v866_v31  ;;  %v476_v44 = vld [vmem:[%s1052_s7] sm:$0xff]  ;;  %s567_s26 = sshll.u32 %s348_s25, 4  ;;  %s569_s11 = sshll.u32 %s565_s24, 4  ;;  %s568_s26 = int_to_ptr.vmem [resolvable:$true] %s567_s26  ;;  %s570_s11 = int_to_ptr.hbm [resolvable:$true] %s569_s11 }
  0x1b   : > { %v471_v37 = vmax.f32 %v674_v32, 0.0  ;;  %675 = vmatmul.msk.f32.vlgmr.msra.gmra.mxu2 %vm402_vm2, %v475_v43  ;;  %v519_v53 = vld [vmem:[%s1049_s4] sm:$0xff]  ;;  %s796_s30 = sshra.s32 %s570_s11, 4  ;;  %s802_s21 = scalar_lea.hbm %s1053_s8, 16  ;;  %s797_s30 = int_to_ptr.hbm [resolvable:$true] %s796_s30 }
  0x1c   : > { %746 = vrot.lane.b32.xlu0 %v745_v2, %s862_s12  ;;  %766 = vrot.lane.b32.xlu2 %v745_v2, %s864_s16  ;;  %p803_p1 = scmp.lt.s32.totalorder %s797_s30, %s1053_s8 }
  0x24   : > { %751 = vrot.lane.b32.xlu0 %v745_v2, %s863_s14  ;;  %387 = vperm.xlu2 %770, %v384_v13  }
  0x2c   : > { %523 = vperm.xlu2 %770, %v520_v15  }
  0x76   : > { %v767_v20 = vpop.permute.xlu2 %766 }
  0x77   : > { %v768_v21 = vunpack.i.l.bf16 %v767_v20  ;;  %v769_v22 = vunpack.i.h.bf16 %v767_v20 }
  0x79   : > { %v403_v27 = vsel %vm402_vm2, %v768_v21, %v769_v22 }
  0x7e   : > { %v388_v34 = vpop.permute.xlu2 %387 }
  0x86   : > { %v524_v56 = vpop.permute.xlu2 %523 }
  0x8e   : > { %v747_v3 = vpop.permute.xlu0 %746 }
  0x8f   : > { %v749_v4 = vunpack.i.h.bf16 %v747_v3  ;;  %v748_v5 = vunpack.i.l.bf16 %v747_v3 }
  0x91   : > { %v382_v6 = vsel %vm381_vm0, %v748_v5, %v749_v4 }
  0x92   : > { %v755_v7 = vpack.i.bf16 %v749_v4, %v382_v6 }
  0x94   : > { %756 = vrot.lane.b32.xlu1 %v755_v7, %s864_s16 }
  0x96   : > { %v752_v8 = vpop.permute.xlu0 %751 }
  0x97   : > { %v754_v9 = vunpack.i.h.bf16 %v752_v8  ;;  %v753_v10 = vunpack.i.l.bf16 %v752_v8 }
  0x99   : > { %v376_v11 = vsel %vm375_vm1, %v753_v10, %v754_v9 }
  0x9a   : > { %v760_v12 = vpack.i.bf16 %v754_v9, %v376_v11 }
  0x9c   : > { %761 = vrot.lane.b32.xlu1 %v760_v12, %s864_s16  ;;  %s554_s16 = scalar_lea.sflag [#allocation3], %s346_s19 }
  0x9e   : > { %v502_v54 = vpop.f32.mrf.mxu2 }
 0x106   : > { %v757_v16 = vpop.permute.xlu1 %756 }
 0x107   : > { %v758_v17 = vunpack.i.l.bf16 %v757_v16  ;;  %v759_v18 = vunpack.i.h.bf16 %v757_v16 }
 0x109   : > { %449 = vmatpush.msra.mxu1 %v759_v18  ;;  %v405_v19 = vsel %vm402_vm2, %v758_v17, %v759_v18 }
 0x10a   : > { %429 = vmatpush.msra.mxu0 %v405_v19 }
 0x10e   : > { %v762_v23 = vpop.permute.xlu1 %761 }
 0x10f   : > { %v763_v24 = vunpack.i.l.bf16 %v762_v23  ;;  %v764_v25 = vunpack.i.h.bf16 %v762_v23 }
 0x111   : > { %450 = vmatpush.msra.mxu1 %v764_v25  ;;  %v404_v26 = vsel %vm402_vm2, %v763_v24, %v764_v25 }
 0x112   : > { %430 = vmatpush.msra.mxu0 %v404_v26 }
 0x113   : > { %451 = vmatpush.msra.mxu1 %v769_v22 }
 0x114   : > { %431 = vmatpush.msra.mxu0 %v403_v27  ;;  %673 = vmatmul.msk.f32.vlgmr.msra.gmra.mxu1 %vm412_vm3, %v383_v28 }
 0x115   : > { %672 = vmatmul.msk.f32.vlgmr.msra.gmra.mxu0 %vm412_vm3, %v383_v28 }
 0x191   : > { %v453_v33 = vpop.f32.mrf.mxu1 }
 0x192   : > { %v433_v35 = vpop.f32.mrf.mxu0  ;;  %v454_v38 = vadd.f32 %v453_v33, %v388_v34 }
 0x193   : > { %v434_v36 = vadd.f32 %v433_v35, %v388_v34 }
 0x194   : > { %v457_v41 = vmax.f32 %v454_v38, 0.0 }
 0x195   : > { %v456_v39 = vmax.f32 %v434_v36, 0.0 }
 0x197   : > { %v473_v40 = vmul.f32 %v471_v37, %v456_v39 }
 0x199   : > { %v776_v42 = vpack.i.bf16 %v457_v41, %v473_v40 }
 0x19b   : > { %777 = vrot.lane.b32.xlu1 %v776_v42, %s863_s14  ;;  %772 = vrot.lane.b32.xlu0 %v776_v42, %s862_s12  ;;  %s798_s12 = scalar_lea.hbm %s797_s30, 8 }
 0x19c   : > { %p799_p12 = scmp.ne.s32.totalorder %s797_s30, %s798_s12  ;;  %p804_p2 = scmp.lt.s32.totalorder %s802_s21, %s798_s12 }
 0x19e   : > { %p800_p13 = pnand %p799_p12, %p952_p4  ;;  %p805_p3 = por %p804_p2, %p803_p1 }
 0x1a0   : > { %p801_p0 = pneg %p800_p13 }
 0x1a2   : > { %p806_p5 = pnand %p805_p3, %p801_p0 }
 0x1a3   : > { %479 = vperm.xlu0 %781, %v476_v44  }
 0x20d   : > { %v778_v45 = vpop.permute.xlu1 %777  ;;  %v773_v46 = vpop.permute.xlu0 %772 }
 0x20e   : > { %v780_v47 = vunpack.i.h.bf16 %v778_v45  ;;  %v779_v48 = vunpack.i.l.bf16 %v778_v45  ;;  %v775_v49 = vunpack.i.h.bf16 %v773_v46  ;;  %v774_v50 = vunpack.i.l.bf16 %v773_v46 }
 0x210   : > { %v517_v51 = vsel %vm381_vm0, %v774_v50, %v775_v49  ;;  %v511_v52 = vsel %vm375_vm1, %v779_v48, %v780_v47 }
 0x211   : > { %542 = vmatpush.msra.mxu3 %v517_v51 }
 0x213   : > { %543 = vmatpush.msra.mxu3 %v511_v52 }
 0x215   : > { %544 = vmatpush.msra.mxu3 %v473_v40  ;;  %v480_v55 = vpop.permute.xlu0 %479 }
 0x216   : > { %676 = vmatmul.msk.f32.vlgmr.msra.gmra.mxu3 %vm412_vm3, %v519_v53  ;;  %v503_v59 = vadd.f32 %v502_v54, %v480_v55 }
 0x299   : > { %v546_v57 = vpop.f32.mrf.mxu3 }
 0x29a   : > { %v547_v58 = vadd.f32 %v546_v57, %v524_v56 }
 0x29c   : > { %v549_v60 = vmax.f32 %v547_v58, 0.0 }
 0x29e   : > { %v550_v61 = vadd.f32 %v549_v60, %v503_v59 }
 0x2a0   : > { %v551_v62 = vmax.f32 %v550_v61, 0.0 }
 0x2a2   : > { %552 = vst [vmem:[%s348_s25] sm:$0xff] %v551_v62 }
 0x2a3   : > { %809 = shalt.err (!%p806_p5)
}
 0x2a4   : > { %685 = dma.vmem_to_hbm [thread:$0]  (%p952_p4), %s568_s26, 128, %s570_s11, %s554_s16  }
 0x2a5 PF: > { %p691_p6 = scmp.ge.s32.totalorder %s860_s10, 2  ;;  %s581_s19 = sand.u32 1, %s840_s27  }
 0x2a6   : > { %s582_s24 = scalar_lea.sflag [#allocation3], %s581_s19 }
 0x2a7   : > { %p688_p7 = pnand %p691_p6, %p959_p8 }
 0x2a9   : > { %p689_p9 = pneg %p688_p7 }
 0x2ab   : > { %835 = dma.done.wait (%p689_p9), %s582_s24, 128  }
 0x2ac   : > { %837 = vsyncadd (%p689_p9), %s582_s24, 4294967168  ;;  %s21_s10 = sadd.s32 1, %s860_s10   ;;  %s1056_s27 = smov %s844_s28 }
 0x2ad   : > { %p18_p10 = scmp.ge.s32.totalorder %s21_s10, 4   ;;  %s1057_s28 = smov %s848_s29 }
 0x2ae   : > { %s1058_s29 = smov %s965_s18  ;;  %s1059_s30 = smov %s856_s9 }
 0x2af   : > { %s1060_s9 = smov %s1062_s13  ;;  %20 = sbr.rel (!%p18_p10) target bundleno = 4 (0x4), region = 90 }
 0x2b4   :  { %588 = vsyncpa [#allocation3], 1 }
 0x2b5   :  { %590 = vsyncpa [#allocation3 + $0x1], 1 }

</bundles_post_ra>
